<compile_context>
chip_gen: v7x
topology: tpu7x:2x2x1
jax: 0.10.0
libtpu: 0.0.40
codegen_flags: <defaults>
</compile_context>

<pallas_src>
import functools

import jax
import jax.numpy as jnp
from jax.experimental import pallas as pl
from jax.experimental.pallas import tpu as pltpu


def _caudal_kernel(x_ref, w1t_ref, b1_ref, w2t_ref, b2_ref, w3_ref, b3_ref,
                   o_ref, *, sub):
    # x_ref : (bn, F)  f32      (batch on sublanes, features on lanes)
    # w1t   : (F, 128) bf16     w2t: (128, 64) bf16   w3: (1, 64) f32
    # b1    : (1, 128) f32      b2 : (1, 64)  f32     b3: (1, 1)  f32
    # o_ref : (bn, 1)  f32
    n_sub = x_ref.shape[0] // sub          # static

    # Weights / biases loaded once per grid step (hoisted out of the loop).
    w1t = w1t_ref[...]
    w2t = w2t_ref[...]
    b1 = b1_ref[...]
    b2 = b2_ref[...]
    w3 = w3_ref[...]
    b3 = b3_ref[...]

    def body(j, carry):
        r = pl.multiple_of(j * sub, sub)
        xs = x_ref[pl.ds(r, sub), :].astype(jnp.bfloat16)            # (sub, F)

        # fc1 + ReLU  (weights are the stationary MXU operand, f32 accum)
        h1 = jnp.dot(xs, w1t, preferred_element_type=jnp.float32)    # (sub, 128)
        h1 = jnp.maximum(h1 + b1, 0.0)

        # fc2 + ReLU
        h2 = jnp.dot(h1.astype(jnp.bfloat16), w2t,
                     preferred_element_type=jnp.float32)              # (sub, 64)
        h2 = jnp.maximum(h2 + b2, 0.0)

        # fc3 (single output): VPU multiply + lane reduction (MXU stays free),
        # then clamp(min=0) == ReLU.
        y = jnp.sum(h2 * w3, axis=1, keepdims=True) + b3              # (sub, 1)
        o_ref[pl.ds(r, sub), :] = jnp.maximum(y, 0.0).astype(o_ref.dtype)
        return carry

    jax.lax.fori_loop(0, n_sub, body, 0)


@functools.partial(jax.jit, static_argnames=("block_n",))
def caudal_nn_forward(x, w1, b1, w2, b2, w3, b3, *, block_n=8192):
    """x: (N, F) float32 -> (N, 1) float32.

    Params are PyTorch nn.Linear layout: w (out, in), b (out,).
    """
    n, f = x.shape
    h1_dim = w1.shape[0]
    h2_dim = w2.shape[0]
    out_dim = w3.shape[0]

    # ---- batch-tile selection -------------------------------------------
    block_n = max(512, (block_n // 512) * 512)
    if n <= 512:
        bn = n                        # single tile; block dims == full array dims
    else:
        # >= 4 tiles when possible (v7x: 2 TCs + pipelining); tile a multiple
        # of 512 for MXU column groups / (8,128) layout alignment.
        t = max(pl.cdiv(n, block_n), min(4, pl.cdiv(n, 512)))
        bn = pl.cdiv(pl.cdiv(n, t), 512) * 512
    sub = 512 if bn % 512 == 0 else bn
    grid = (pl.cdiv(n, bn),)          # ragged tail handled by Pallas masking

    # One-time tiny parameter reshapes (<= ~32 KiB total).
    w1t = jnp.transpose(w1).astype(jnp.bfloat16)            # (F, 128)
    w2t = jnp.transpose(w2).astype(jnp.bfloat16)            # (128, 64)
    b1r = b1.reshape(1, h1_dim).astype(jnp.float32)         # (1, 128)
    b2r = b2.reshape(1, h2_dim).astype(jnp.float32)         # (1, 64)
    w3r = w3.reshape(out_dim, h2_dim).astype(jnp.float32)   # (1, 64)
    b3r = b3.reshape(1, out_dim).astype(jnp.float32)        # (1, 1)

    # VMEM budget: double-buffered x / out blocks (narrow dims lane-pad to 128)
    # + ~1.5 MiB of per-sub-tile f32 temporaries + weights.
    est_vmem = 4 * bn * 128 * 4 + (4 << 20)
    vmem_limit = int(min(48 << 20, max(32 << 20, est_vmem)))

    kernel = functools.partial(_caudal_kernel, sub=sub)

    out = pl.pallas_call(
        kernel,
        out_shape=jax.ShapeDtypeStruct((n, out_dim), jnp.float32),
        grid_spec=pltpu.PrefetchScalarGridSpec(
            num_scalar_prefetch=0,
            grid=grid,
            in_specs=[
                pl.BlockSpec((bn, f), lambda i: (i, 0)),             # x tile
                pl.BlockSpec((f, h1_dim), lambda i: (0, 0)),         # w1^T
                pl.BlockSpec((1, h1_dim), lambda i: (0, 0)),         # b1
                pl.BlockSpec((h1_dim, h2_dim), lambda i: (0, 0)),    # w2^T
                pl.BlockSpec((1, h2_dim), lambda i: (0, 0)),         # b2
                pl.BlockSpec((out_dim, h2_dim), lambda i: (0, 0)),   # w3
                pl.BlockSpec((1, out_dim), lambda i: (0, 0)),        # b3
            ],
            out_specs=pl.BlockSpec((bn, out_dim), lambda i: (i, 0)),
        ),
        compiler_params=pltpu.CompilerParams(
            dimension_semantics=("parallel",),
            vmem_limit_bytes=vmem_limit,
        ),
    )(x.astype(jnp.float32), w1t, b1r, w2t, b2r, w3r, b3r)
    return out


def init_params(key, input_size):
    """Deterministic init mimicking nn.Linear's U(-1/sqrt(fan_in), 1/sqrt(fan_in)).

    Weights are (out, in) (PyTorch layout), biases are (out,).
    """
    def linear(k, fan_in, fan_out):
        kw, kb = jax.random.split(k)
        bound = 1.0 / jnp.sqrt(fan_in)
        w = jax.random.uniform(kw, (fan_out, fan_in), jnp.float32, -bound, bound)
        b = jax.random.uniform(kb, (fan_out,), jnp.float32, -bound, bound)
        return w, b

    k1, k2, k3 = jax.random.split(key, 3)
    w1, b1 = linear(k1, input_size, 128)
    w2, b2 = linear(k2, 128, 64)
    w3, b3 = linear(k3, 64, 1)
    return w1, b1, w2, b2, w3, b3


def reference_forward(x, w1, b1, w2, b2, w3, b3):
    # Pure f32 reference of the PyTorch forward (weights are (out, in)).
    h1 = jnp.maximum(x @ w1.T + b1, 0.0)
    h2 = jnp.maximum(h1 @ w2.T + b2, 0.0)
    return jnp.maximum(h2 @ w3.T + b3, 0.0)


if __name__ == "__main__":
    key = jax.random.PRNGKey(0)
    k_x, k_x2, k_p = jax.random.split(key, 3)

    # Small synthetic stand-in for the MinMax-scaled CSV features:
    # values in [0, 1] like MinMaxScaler output.
    batch, input_size = 16, 8
    x = jax.random.uniform(k_x, (batch, input_size), jnp.float32)
    params = init_params(k_p, input_size)

    # Single-tile path.
    out = jax.block_until_ready(caudal_nn_forward(x, *params))
    ref = reference_forward(x, *params)
    assert out.shape == (batch, 1), out.shape
    assert jnp.allclose(out, ref, atol=5e-2, rtol=5e-2), "mismatch vs reference"

    # Multi-tile path with a ragged final tile (exercises grid + boundary masking).
    batch2 = 1537
    x2 = jax.random.uniform(k_x2, (batch2, input_size), jnp.float32)
    out2 = jax.block_until_ready(caudal_nn_forward(x2, *params))
    ref2 = reference_forward(x2, *params)
    assert out2.shape == (batch2, 1), out2.shape
    assert jnp.allclose(out2, ref2, atol=5e-2, rtol=5e-2), "mismatch vs reference (multi-tile)"

    print("KERNEL_OK")
</pallas_src>

<mosaic_0001>
module attributes {stable_mosaic.version = 11 : i64} {
  func.func @_caudal_kernel(%arg0: i32, %arg1: memref<16x8xf32, #tpu.memory_space<vmem>>, %arg2: memref<8x128xbf16, #tpu.memory_space<vmem>>, %arg3: memref<1x128xf32, #tpu.memory_space<vmem>>, %arg4: memref<128x64xbf16, #tpu.memory_space<vmem>>, %arg5: memref<1x64xf32, #tpu.memory_space<vmem>>, %arg6: memref<1x64xf32, #tpu.memory_space<vmem>>, %arg7: memref<1x1xf32, #tpu.memory_space<vmem>>, %arg8: memref<16x1xf32, #tpu.memory_space<vmem>>) attributes {dimension_semantics = [#tpu.dimension_semantics<parallel>], iteration_bounds = array<i64: 1>, scalar_prefetch = 0 : i64, scratch_operands = 0 : i64, tpu.core_type = #tpu.core_type<tc>, window_params = [{transform_indices = @transform_0, window_bounds = array<i64: 16, 8>}, {pipeline_mode = #tpu.pipeline_mode<synchronous>, transform_indices = @transform_1, window_bounds = array<i64: 8, 128>}, {pipeline_mode = #tpu.pipeline_mode<synchronous>, transform_indices = @transform_2, window_bounds = array<i64: 1, 128>}, {pipeline_mode = #tpu.pipeline_mode<synchronous>, transform_indices = @transform_3, window_bounds = array<i64: 128, 64>}, {pipeline_mode = #tpu.pipeline_mode<synchronous>, transform_indices = @transform_4, window_bounds = array<i64: 1, 64>}, {pipeline_mode = #tpu.pipeline_mode<synchronous>, transform_indices = @transform_5, window_bounds = array<i64: 1, 64>}, {pipeline_mode = #tpu.pipeline_mode<synchronous>, transform_indices = @transform_6, window_bounds = array<i64: 1, 1>}, {transform_indices = @transform_7, window_bounds = array<i64: 16, 1>}]} {
    %c0 = arith.constant 0 : index
    %c0_0 = arith.constant 0 : index
    %0 = vector.load %arg2[%c0, %c0_0] : memref<8x128xbf16, #tpu.memory_space<vmem>>, vector<8x128xbf16>
    %c0_1 = arith.constant 0 : index
    %c0_2 = arith.constant 0 : index
    %1 = vector.load %arg4[%c0_1, %c0_2] : memref<128x64xbf16, #tpu.memory_space<vmem>>, vector<128x64xbf16>
    %c0_3 = arith.constant 0 : index
    %c0_4 = arith.constant 0 : index
    %2 = vector.load %arg3[%c0_3, %c0_4] : memref<1x128xf32, #tpu.memory_space<vmem>>, vector<1x128xf32>
    %c0_5 = arith.constant 0 : index
    %c0_6 = arith.constant 0 : index
    %3 = vector.load %arg5[%c0_5, %c0_6] : memref<1x64xf32, #tpu.memory_space<vmem>>, vector<1x64xf32>
    %c0_7 = arith.constant 0 : index
    %c0_8 = arith.constant 0 : index
    %4 = vector.load %arg6[%c0_7, %c0_8] : memref<1x64xf32, #tpu.memory_space<vmem>>, vector<1x64xf32>
    %c0_9 = arith.constant 0 : index
    %c0_10 = arith.constant 0 : index
    %5 = vector.load %arg7[%c0_9, %c0_10] : memref<1x1xf32, #tpu.memory_space<vmem>>, vector<1x1xf32>
    %c0_i32 = arith.constant 0 : i32
    %c16_i32 = arith.constant 16 : i32
    %6 = arith.muli %c0_i32, %c16_i32 : i32
    %7 = tpu.assume_multiple %6, 16 : i32
    %8 = arith.index_cast %7 : i32 to index
    %c0_11 = arith.constant 0 : index
    %9 = vector.load %arg1[%8, %c0_11] : memref<16x8xf32, #tpu.memory_space<vmem>>, vector<16x8xf32>
    %10 = arith.truncf %9 : vector<16x8xf32> to vector<16x8xbf16>
    %cst = arith.constant dense<0.000000e+00> : vector<16x128xf32>
    %11 = tpu.matmul %10, %0, %cst {dimension_numbers = #tpu.dot_dimension_numbers<[1], [0], [0], [1], [0, 0, 1, 1], [], []>} : vector<16x8xbf16>, vector<8x128xbf16>, vector<16x128xf32> -> vector<16x128xf32>
    %12 = vector.broadcast %2 : vector<1x128xf32> to vector<16x128xf32>
    %13 = arith.addf %11, %12 : vector<16x128xf32>
    %cst_12 = arith.constant 0.000000e+00 : f32
    %14 = vector.broadcast %cst_12 : f32 to vector<16x128xf32>
    %15 = arith.maximumf %13, %14 : vector<16x128xf32>
    %16 = arith.truncf %15 : vector<16x128xf32> to vector<16x128xbf16>
    %cst_13 = arith.constant dense<0.000000e+00> : vector<16x64xf32>
    %17 = tpu.matmul %16, %1, %cst_13 {dimension_numbers = #tpu.dot_dimension_numbers<[1], [0], [0], [1], [0, 0, 1, 1], [], []>} : vector<16x128xbf16>, vector<128x64xbf16>, vector<16x64xf32> -> vector<16x64xf32>
    %18 = vector.broadcast %3 : vector<1x64xf32> to vector<16x64xf32>
    %19 = arith.addf %17, %18 : vector<16x64xf32>
    %cst_14 = arith.constant 0.000000e+00 : f32
    %20 = vector.broadcast %cst_14 : f32 to vector<16x64xf32>
    %21 = arith.maximumf %19, %20 : vector<16x64xf32>
    %22 = vector.broadcast %4 : vector<1x64xf32> to vector<16x64xf32>
    %23 = arith.mulf %21, %22 : vector<16x64xf32>
    %cst_15 = arith.constant dense<0.000000e+00> : vector<16xf32>
    %24 = vector.multi_reduction <add>, %23, %cst_15 [1] : vector<16x64xf32> to vector<16xf32>
    %25 = vector.shape_cast %24 : vector<16xf32> to vector<16x1xf32>
    %26 = vector.broadcast %5 : vector<1x1xf32> to vector<16x1xf32>
    %27 = arith.addf %25, %26 : vector<16x1xf32>
    %cst_16 = arith.constant 0.000000e+00 : f32
    %28 = vector.broadcast %cst_16 : f32 to vector<16x1xf32>
    %29 = arith.maximumf %27, %28 : vector<16x1xf32>
    %30 = arith.index_cast %7 : i32 to index
    %c0_17 = arith.constant 0 : index
    %31 = vector.load %arg8[%30, %c0_17] : memref<16x1xf32, #tpu.memory_space<vmem>>, vector<16x1xf32>
    tpu.vector_store %arg8[%30, %c0_17], %29 {strides = array<i32>} : memref<16x1xf32, #tpu.memory_space<vmem>>, vector<16x1xf32>,
    %c1_i32 = arith.constant 1 : i32
    return
  }
  func.func @transform_0(%arg0: i32) -> (i32, i32) {
    %c0_i32 = arith.constant 0 : i32
    %c0_i32_0 = arith.constant 0 : i32
    return %arg0, %c0_i32 : i32, i32
  }
  func.func @transform_1(%arg0: i32) -> (i32, i32) {
    %c0_i32 = arith.constant 0 : i32
    %c0_i32_0 = arith.constant 0 : i32
    %c0_i32_1 = arith.constant 0 : i32
    return %c0_i32, %c0_i32_0 : i32, i32
  }
  func.func @transform_2(%arg0: i32) -> (i32, i32) {
    %c0_i32 = arith.constant 0 : i32
    %c0_i32_0 = arith.constant 0 : i32
    %c0_i32_1 = arith.constant 0 : i32
    return %c0_i32, %c0_i32_0 : i32, i32
  }
  func.func @transform_3(%arg0: i32) -> (i32, i32) {
    %c0_i32 = arith.constant 0 : i32
    %c0_i32_0 = arith.constant 0 : i32
    %c0_i32_1 = arith.constant 0 : i32
    return %c0_i32, %c0_i32_0 : i32, i32
  }
  func.func @transform_4(%arg0: i32) -> (i32, i32) {
    %c0_i32 = arith.constant 0 : i32
    %c0_i32_0 = arith.constant 0 : i32
    %c0_i32_1 = arith.constant 0 : i32
    return %c0_i32, %c0_i32_0 : i32, i32
  }
  func.func @transform_5(%arg0: i32) -> (i32, i32) {
    %c0_i32 = arith.constant 0 : i32
    %c0_i32_0 = arith.constant 0 : i32
    %c0_i32_1 = arith.constant 0 : i32
    return %c0_i32, %c0_i32_0 : i32, i32
  }
  func.func @transform_6(%arg0: i32) -> (i32, i32) {
    %c0_i32 = arith.constant 0 : i32
    %c0_i32_0 = arith.constant 0 : i32
    %c0_i32_1 = arith.constant 0 : i32
    return %c0_i32, %c0_i32_0 : i32, i32
  }
  func.func @transform_7(%arg0: i32) -> (i32, i32) {
    %c0_i32 = arith.constant 0 : i32
    %c0_i32_0 = arith.constant 0 : i32
    return %arg0, %c0_i32 : i32, i32
  }
}

</mosaic_0001>

<bundles_post_ra>
// kernel: caudal_nn_forward.1
= control target key start
LH: loop header
LB: loop body
LE: loop exit
PB: predicated region body
PF: predicated region fallthrough
CT: control target
= control target key end

     0   :  { %vm63_vm0 = vcmask 1043456   ;;  %v300_v0 = vmov 0.0   ;;  %vm301_vm1 = vmmov 0   ;;  %vm59_vm2 = vcmask 64512   ;;  %s393_s1 = inlined_call_operand.vmem [shape: bf16[8,128], index: 1, kind: input, shape index: {}]   ;;  %s394_s0 = inlined_call_operand.vmem [shape: f32[16,8], index: 0, kind: input, shape index: {}]   ;;  %s395_s3 = inlined_call_operand.vmem [shape: bf16[128,64], index: 3, kind: input, shape index: {}]   ;;  %s396_s2 = inlined_call_operand.vmem [shape: f32[1,128], index: 2, kind: input, shape index: {}]   ;;  %s397_s6 = inlined_call_operand.<no memory space> [shape: f32[1,1], index: 6, kind: input, shape index: {}]   ;;  %s398_s4 = inlined_call_operand.vmem [shape: f32[1,64], index: 4, kind: input, shape index: {}]   ;;  %s399_s5 = inlined_call_operand.vmem [shape: f32[1,64], index: 5, kind: input, shape index: {}]   ;;  %s400_s7 = inlined_call_operand.vmem [shape: f32[16,1], index: 7, kind: output, shape index: {}]  }
   0x1   :  { %264 = vmatprep.subr.bf16.mxu0 %v300_v0  ;;  %v29_v1 = vld [vmem:[%s393_s1] sm:$0xf]  ;;  %266 = vmatprep.mubr.msk.bf16.mxu0 %vm301_vm1, %v300_v0  ;;  %v51_v3 = vld [vmem:[%s394_s0 + $0x8] sm:$0xff]  ;;  %v294_v8 = vld [vmem:[%s395_s3 + $0x10] sm:$0xff]   ;;  %v12_v24 = vstv %s397_s6  ;;  %vm216_vm3 = vcmask 523264   ;;  %vm233_vm4 = vcmask 7168  }
   0x2   :  { %v50_v2 = vld [vmem:[%s394_s0] sm:$0xff]  ;;  %v65_v4 = vsel %vm63_vm0, %v29_v1, 0  ;;  %270 = vmatprep.subr.bf16.mxu1 %v300_v0  ;;  %286 = vmatprep.mubr.msk.bf16.mxu1 %vm301_vm1, %v300_v0  ;;  %v293_v7 = vld [vmem:[%s395_s3 + $0x8] sm:$0xff]   ;;  %v295_v9 = vld [vmem:[%s395_s3 + $0x18] sm:$0xff]   ;;  %13 = vst [vmem:[#allocation2] sm:$0x1] %v12_v24 }
   0x3   :  { %v52_v5 = vpack.c.bf16 %v51_v3, %v50_v2  ;;  %v292_v6 = vld [vmem:[%s395_s3] sm:$0xff]   ;;  %265 = vmatpush3.bf16.msra.mxu0 %v65_v4  ;;  %v297_v11 = vld [vmem:[%s395_s3 + $0x28] sm:$0xff]   ;;  %v298_v12 = vld [vmem:[%s395_s3 + $0x30] sm:$0xff]  }
   0x4   :  { %271 = vmatpush3.bf16.msra.mxu1 %v292_v6  ;;  %v296_v10 = vld [vmem:[%s395_s3 + $0x20] sm:$0xff]   ;;  %v299_v13 = vld [vmem:[%s395_s3 + $0x38] sm:$0xff]  }
   0x5   :  { %272 = vmatprep.subr.bf16.mxu1 %v300_v0  ;;  %v240_v14 = vld [vmem:[%s396_s2] ss:$0 sm:$0xff] }
   0x6   :  { %267 = vmatmul.mubr.msk.bf16.vlgmr.msra.gmra.mrb[0].mxu0 %vm59_vm2, %v52_v5  ;;  %v242_v25 = vld [vmem:[%s398_s4] ss:$0 sm:$0xff] }
   0x7   :  { %v251_v30 = vld [vmem:[%s399_s5] ss:$0 sm:$0xff] }
   0x8   :  { %273 = vmatpush3.bf16.msra.mxu1 %v293_v7 }
   0x9   :  { %274 = vmatprep.subr.bf16.mxu1 %v300_v0  ;;  %v252_v39 = vld [vmem:[#allocation2] ss:$0 sm:$0xff] }
   0xc   :  { %275 = vmatpush3.bf16.msra.mxu1 %v294_v8 }
   0xd   :  { %276 = vmatprep.subr.bf16.mxu1 %v300_v0 }
  0x10   :  { %277 = vmatpush3.bf16.msra.mxu1 %v295_v9 }
  0x11   :  { %278 = vmatprep.subr.bf16.mxu1 %v300_v0 }
  0x14   :  { %279 = vmatpush3.bf16.msra.mxu1 %v296_v10 }
  0x15   :  { %280 = vmatprep.subr.bf16.mxu1 %v300_v0 }
  0x18   :  { %281 = vmatpush3.bf16.msra.mxu1 %v297_v11 }
  0x19   :  { %282 = vmatprep.subr.bf16.mxu1 %v300_v0 }
  0x1c   :  { %283 = vmatpush3.bf16.msra.mxu1 %v298_v12 }
  0x1d   :  { %284 = vmatprep.subr.bf16.mxu1 %v300_v0 }
  0x20   :  { %285 = vmatpush3.bf16.msra.mxu1 %v299_v13 }
  0xd9   :  { %v101_v15 = vpop.f32.mrb[0].mxu0 }
  0xda   :  { %v102_v16 = vadd.f32 %v240_v14, %v101_v15  ;;  %v268_v17 = vpop.f32.mrb[1].mxu0 }
  0xdb   :  { %v104_v18 = vpop.f32.mrb[2].mxu0 }
  0xdc   :  { %v105_v19 = vadd.f32 %v240_v14, %v104_v18  ;;  %v269_v20 = vpop.f32.mrb[3].mxu0  ;;  %v108_v21 = vmax.f32 %v102_v16, 0.0 }
  0xde   :  { %v109_v22 = vmax.f32 %v105_v19, 0.0 }
  0xe0   :  { %v110_v23 = vpack.c.bf16 %v109_v22, %v108_v21 }
  0xe2   :  { %287 = vmatmul.mubr.bf16.vlgmr.msra.gmra.mrb[0].mxu1 %v110_v23 }
 0x1b5   :  { %v199_v26 = vpop.f32.mrb[0].mxu1 }
 0x1b6   :  { %v200_v27 = vadd.f32 %v242_v25, %v199_v26  ;;  %v288_v28 = vpop.f32.mrb[1].mxu1 }
 0x1b7   :  { %v202_v29 = vpop.f32.mrb[2].mxu1 }
 0x1b8   :  { %v206_v31 = vmax.f32 %v200_v27, 0.0  ;;  %v203_v32 = vadd.f32 %v242_v25, %v202_v29  ;;  %v289_v33 = vpop.f32.mrb[3].mxu1 }
 0x1ba   :  { %v207_v34 = vmax.f32 %v203_v32, 0.0  ;;  %v214_v35 = vmul.f32 %v251_v30, %v206_v31 }
 0x1bc   :  { %v217_v36 = vsel %vm216_vm3, %v214_v35, 0.0  ;;  %v215_v37 = vmul.f32 %v251_v30, %v207_v34 }
 0x1bd   :  { %218 = vadd.xlane.f32.xlu0 %v217_v36 }
 0x1be   :  { %v220_v38 = vsel %vm216_vm3, %v215_v37, 0.0 }
 0x1c1   :  { %221 = vadd.xlane.f32.xlu0 %v220_v38 }
 0x24a   :  { %v219_v40 = vpop.xlane.xlu0 %218 }
 0x24b   :  { %v229_v41 = vadd.f32 %v252_v39, %v219_v40 }
 0x24d   :  { %v231_v42 = vmax.f32 %v229_v41, 0.0 }
 0x24e   :  { %v222_v43 = vpop.xlane.xlu0 %221 }
 0x24f   :  { %234 = vst.msk [vmem:[%s400_s7] sm:$0xff] %vm233_vm4, %v231_v42  ;;  %v230_v44 = vadd.f32 %v252_v39, %v222_v43 }
 0x251   :  { %v232_v45 = vmax.f32 %v230_v44, 0.0 }
 0x253   :  { %235 = vst.msk [vmem:[%s400_s7 + $0x8] sm:$0xff] %vm233_vm4, %v232_v45 }

</bundles_post_ra>
